<compile_context>
chip_gen: v7x
topology: tpu7x:2x2x1
jax: 0.10.0
libtpu: 0.0.40
codegen_flags: <defaults>
</compile_context>

<pallas_src>
import functools

import jax
import jax.numpy as jnp
from jax.experimental import pallas as pl
from jax.experimental.pallas import tpu as pltpu


def _cdiv(a, b):
    return -(-a // b)


def _round_up(n, m):
    return _cdiv(n, m) * m


_VMEM_BUDGET_BYTES = 32 * 1024 * 1024   # ~half of v7x's 64 MiB physical VMEM


def ffnn_kernel(x_ref, w1_ref, b1_ref, w2_ref, b2_ref, w3_ref, b3_ref, o_ref, *,
                chunk):
    # x_ref : [bt, D]  f32   (native layout: batch on sublanes, features on lanes)
    # w1_ref: [64, D]  bf16   b1_ref: [64, 1] f32
    # w2_ref: [32, 64] bf16   b2_ref: [32, 1] f32
    # w3_ref: [32, 1]  f32    b3_ref: [1, 1]  f32
    # o_ref : [1, bt]  f32    (lane-dense output slab)
    n_chunks = x_ref.shape[0] // chunk      # static: wrapper guarantees bt % chunk == 0

    def process(start):
        # bf16 cast of the x chunk happens here (MXU operand only; no HBM pass).
        xc = x_ref[pl.ds(start, chunk), :].astype(jnp.bfloat16)          # [chunk, D]

        # Layer 1: contract D (last dim of both operands) -> [64, chunk];
        # the batch dimension lands on lanes, keeping everything lane-dense.
        h1 = jax.lax.dot_general(
            w1_ref[...], xc, (((1,), (1,)), ((), ())),
            preferred_element_type=jnp.float32)
        h1 = jnp.maximum(h1 + b1_ref[...], 0.0)                          # f32 on VPU

        # Layer 2: [32, 64] @ [64, chunk] -> [32, chunk], bf16 MXU / f32 accumulate.
        h2 = jnp.dot(w2_ref[...], h1.astype(jnp.bfloat16),
                     preferred_element_type=jnp.float32)
        h2 = jnp.maximum(h2 + b2_ref[...], 0.0)

        # Layer 3 (out features = 1): VPU broadcast-multiply + sublane (XLU) reduce;
        # keeps the MXU slot free and the output lane-dense.
        out = jnp.sum(h2 * w3_ref[...], axis=0, keepdims=True) + b3_ref[...]
        o_ref[:, pl.ds(start, chunk)] = out.astype(o_ref.dtype)

    if n_chunks == 1:
        process(0)
    else:
        def body(c, carry):
            process(pl.multiple_of(c * chunk, chunk))
            return carry
        jax.lax.fori_loop(0, n_chunks, body, None, unroll=True)


def _select_tiling(B, D, batch_tile, num_tensorcores):
    """Pick (bt, B_pad, grid_steps, chunk) from the VMEM budget and core count."""
    # Bytes of VMEM per batch column: double-buffered f32 x tile + double-buffered out row.
    per_col = 2 * D * 4 + 2 * 4
    bt_cap = max(128, ((_VMEM_BUDGET_BYTES // 2) // per_col) // 128 * 128)
    max_tile = max(128, min(_round_up(batch_tile, 128), bt_cap))

    if num_tensorcores <= 1 and B <= max_tile:
        # Single TensorCore and everything fits one tile: one full block, zero
        # padding, no extra ~600-cycle grid steps (v5e/v6e fast path).
        bt, B_pad = B, B
    else:
        b128 = _round_up(B, 128)
        n_steps = max(num_tensorcores, _cdiv(b128, max_tile))
        if num_tensorcores > 1:
            n_steps = _round_up(n_steps, num_tensorcores)   # balanced across TCs
        bt = min(max_tile, max(128, _round_up(_cdiv(b128, n_steps), 128)))
        B_pad = _round_up(B, bt)
    grid = max(1, B_pad // bt)

    # In-kernel lane-chunking keeps the f32 h1/h2 working set bounded for big tiles.
    chunk = bt
    for c in (512, 256, 128):
        if bt % c == 0:
            chunk = c
            break
    return bt, B_pad, grid, chunk


@functools.partial(jax.jit, static_argnames=("batch_tile", "num_tensorcores"))
def ffnn_forward(x, params, *, batch_tile=4096, num_tensorcores=1):
    """x: [B, D] f32. params in PyTorch layout:
       (w1[64,D], b1[64], w2[32,64], b2[32], w3[1,32], b3[1])."""
    w1, b1, w2, b2, w3, b3 = params
    B, D = x.shape
    bt, B_pad, grid, chunk = _select_tiling(B, D, batch_tile, num_tensorcores)

    x_in = x.astype(jnp.float32)
    if B_pad != B:
        # Padded rows produce garbage output columns; they are sliced off below.
        x_in = jnp.pad(x_in, ((0, B_pad - B), (0, 0)))

    # Tiny one-time weight prep (bf16 only for the MXU operands of layers 1-2).
    w1b = w1.astype(jnp.bfloat16)                  # [64, D]
    w2b = w2.astype(jnp.bfloat16)                  # [32, 64]
    b1c = b1.reshape(-1, 1).astype(jnp.float32)    # [64, 1]
    b2c = b2.reshape(-1, 1).astype(jnp.float32)    # [32, 1]
    w3c = w3.reshape(-1, 1).astype(jnp.float32)    # [32, 1]
    b3c = b3.reshape(1, 1).astype(jnp.float32)     # [1, 1]

    full = lambda a: pl.BlockSpec(a.shape, lambda i: (0, 0))   # resident weights/biases

    weight_bytes = (w1b.size * 2 + w2b.size * 2
                    + (b1c.size + b2c.size + w3c.size + b3c.size) * 4)
    flops = 2 * B_pad * (D * 64 + 64 * 32 + 32)
    bytes_accessed = B_pad * D * 4 + B_pad * 4 + weight_bytes

    # VMEM limit derived from the double-buffered footprint (+2x slack), capped at
    # ~half of v7x's physical 64 MiB so the same config is safe on every generation.
    tile_bytes = 2 * (bt * D * 4) + 2 * (bt * 4)
    scratch_bytes = chunk * (64 * 4 + 64 * 2 + 32 * 4 + 32 * 2)
    vmem_limit = int(min(max(2 * (tile_bytes + 2 * weight_bytes + scratch_bytes),
                             8 * 1024 * 1024),
                         _VMEM_BUDGET_BYTES))

    out = pl.pallas_call(
        functools.partial(ffnn_kernel, chunk=chunk),
        out_shape=jax.ShapeDtypeStruct((1, B_pad), jnp.float32),
        grid_spec=pltpu.PrefetchScalarGridSpec(
            num_scalar_prefetch=0,
            grid=(grid,),
            in_specs=[
                pl.BlockSpec((bt, D), lambda i: (i, 0)),   # x tile, native [B, D] layout
                full(w1b), full(b1c),
                full(w2b), full(b2c),
                full(w3c), full(b3c),
            ],
            out_specs=pl.BlockSpec((1, bt), lambda i: (0, i)),   # lane-dense output slab
        ),
        compiler_params=pltpu.CompilerParams(
            dimension_semantics=("parallel",),
            vmem_limit_bytes=vmem_limit,
        ),
        cost_estimate=pl.CostEstimate(
            flops=flops, transcendentals=0, bytes_accessed=bytes_accessed),
    )(x_in, w1b, b1c, w2b, b2c, w3c, b3c)

    # Drop padded columns, restore the PyTorch output layout [B, 1].
    return out[0, :B].reshape(B, 1)


def detect_num_tensorcores():
    """Best-effort TensorCores-per-chip (2 on v7x, 1 on v5e/v6e). Falls back to 1."""
    try:
        info = pltpu.get_tpu_info()
        for name in ("num_cores", "core_count", "tensorcores_per_chip", "num_tensorcores"):
            n = getattr(info, name, None)
            if isinstance(n, int) and 1 <= n <= 8:
                return n
    except Exception:
        pass
    return 1


def init_params(key, input_size):
    # Deterministic init mimicking nn.Linear defaults, kept in PyTorch [out, in] layout.
    def linear(key, fan_in, fan_out):
        kw, kb = jax.random.split(key)
        bound = 1.0 / jnp.sqrt(fan_in)
        w = jax.random.uniform(kw, (fan_out, fan_in), jnp.float32, -bound, bound)
        b = jax.random.uniform(kb, (fan_out,), jnp.float32, -bound, bound)
        return w, b

    k1, k2, k3 = jax.random.split(key, 3)
    w1, b1 = linear(k1, input_size, 64)
    w2, b2 = linear(k2, 64, 32)
    w3, b3 = linear(k3, 32, 1)
    return (w1, b1, w2, b2, w3, b3)


def ffnn_reference(x, params):
    # Pure-JAX reference replicating the kernel's bf16-MXU-input / f32-accumulate numerics.
    w1, b1, w2, b2, w3, b3 = params
    _bf = lambda a: a.astype(jnp.bfloat16).astype(jnp.float32)
    hp = jax.lax.Precision.HIGHEST
    h1 = jnp.maximum(jnp.dot(_bf(x), _bf(w1).T, precision=hp) + b1, 0.0)
    h2 = jnp.maximum(jnp.dot(_bf(h1), _bf(w2).T, precision=hp) + b2, 0.0)
    return jnp.sum(h2 * w3, axis=-1, keepdims=True) + b3


if __name__ == "__main__":
    key = jax.random.PRNGKey(0)
    kx, kp = jax.random.split(key)

    input_size = 16
    params = init_params(kp, input_size)
    nc = detect_num_tensorcores()

    # (batch, batch_tile) cases exercise: single full block with no padding (200),
    # the in-kernel 512-lane chunk loop (1024), and the padded multi-step grid (300/128).
    cases = [(200, 4096), (1024, 4096), (300, 128)]
    for idx, (batch, batch_tile) in enumerate(cases):
        kx, sub = jax.random.split(kx)
        x = jax.random.normal(sub, (batch, input_size), jnp.float32)

        out = jax.block_until_ready(
            ffnn_forward(x, params, batch_tile=batch_tile, num_tensorcores=nc))
        ref = ffnn_reference(x, params)

        assert out.shape == (batch, 1), f"case {idx}: bad shape {out.shape}"
        err = float(jnp.max(jnp.abs(out - ref)))
        assert jnp.allclose(out, ref, atol=2e-3, rtol=2e-3), \
            f"case {idx}: max abs err {err}"

    print("KERNEL_OK")
</pallas_src>

<mosaic_0001>
module attributes {stable_mosaic.version = 11 : i64} {
  func.func @ffnn_kernel(%arg0: i32, %arg1: memref<200x16xf32, #tpu.memory_space<vmem>>, %arg2: memref<64x16xbf16, #tpu.memory_space<vmem>>, %arg3: memref<64x1xf32, #tpu.memory_space<vmem>>, %arg4: memref<32x64xbf16, #tpu.memory_space<vmem>>, %arg5: memref<32x1xf32, #tpu.memory_space<vmem>>, %arg6: memref<32x1xf32, #tpu.memory_space<vmem>>, %arg7: memref<1x1xf32, #tpu.memory_space<vmem>>, %arg8: memref<1x200xf32, #tpu.memory_space<vmem>>) attributes {dimension_semantics = [#tpu.dimension_semantics<parallel>], iteration_bounds = array<i64: 1>, scalar_prefetch = 0 : i64, scratch_operands = 0 : i64, tpu.core_type = #tpu.core_type<tc>, window_params = [{transform_indices = @transform_0, window_bounds = array<i64: 200, 16>}, {pipeline_mode = #tpu.pipeline_mode<synchronous>, transform_indices = @transform_1, window_bounds = array<i64: 64, 16>}, {pipeline_mode = #tpu.pipeline_mode<synchronous>, transform_indices = @transform_2, window_bounds = array<i64: 64, 1>}, {pipeline_mode = #tpu.pipeline_mode<synchronous>, transform_indices = @transform_3, window_bounds = array<i64: 32, 64>}, {pipeline_mode = #tpu.pipeline_mode<synchronous>, transform_indices = @transform_4, window_bounds = array<i64: 32, 1>}, {pipeline_mode = #tpu.pipeline_mode<synchronous>, transform_indices = @transform_5, window_bounds = array<i64: 32, 1>}, {pipeline_mode = #tpu.pipeline_mode<synchronous>, transform_indices = @transform_6, window_bounds = array<i64: 1, 1>}, {transform_indices = @transform_7, window_bounds = array<i64: 1, 200>}]} {
    %c0 = arith.constant 0 : index
    %c0_0 = arith.constant 0 : index
    %0 = vector.load %arg1[%c0, %c0_0] : memref<200x16xf32, #tpu.memory_space<vmem>>, vector<200x16xf32>
    %1 = arith.truncf %0 : vector<200x16xf32> to vector<200x16xbf16>
    %c0_1 = arith.constant 0 : index
    %c0_2 = arith.constant 0 : index
    %2 = vector.load %arg2[%c0_1, %c0_2] : memref<64x16xbf16, #tpu.memory_space<vmem>>, vector<64x16xbf16>
    %cst = arith.constant dense<0.000000e+00> : vector<64x200xf32>
    %3 = tpu.matmul %2, %1, %cst {dimension_numbers = #tpu.dot_dimension_numbers<[1], [1], [0], [0], [0, 0, 1, 0], [], []>} : vector<64x16xbf16>, vector<200x16xbf16>, vector<64x200xf32> -> vector<64x200xf32>
    %c0_3 = arith.constant 0 : index
    %c0_4 = arith.constant 0 : index
    %4 = vector.load %arg3[%c0_3, %c0_4] : memref<64x1xf32, #tpu.memory_space<vmem>>, vector<64x1xf32>
    %5 = vector.broadcast %4 : vector<64x1xf32> to vector<64x200xf32>
    %6 = arith.addf %3, %5 : vector<64x200xf32>
    %cst_5 = arith.constant 0.000000e+00 : f32
    %7 = vector.broadcast %cst_5 : f32 to vector<64x200xf32>
    %8 = arith.maximumf %6, %7 : vector<64x200xf32>
    %c0_6 = arith.constant 0 : index
    %c0_7 = arith.constant 0 : index
    %9 = vector.load %arg4[%c0_6, %c0_7] : memref<32x64xbf16, #tpu.memory_space<vmem>>, vector<32x64xbf16>
    %10 = arith.truncf %8 : vector<64x200xf32> to vector<64x200xbf16>
    %cst_8 = arith.constant dense<0.000000e+00> : vector<32x200xf32>
    %11 = tpu.matmul %9, %10, %cst_8 {dimension_numbers = #tpu.dot_dimension_numbers<[1], [0], [0], [1], [0, 0, 1, 1], [], []>} : vector<32x64xbf16>, vector<64x200xbf16>, vector<32x200xf32> -> vector<32x200xf32>
    %c0_9 = arith.constant 0 : index
    %c0_10 = arith.constant 0 : index
    %12 = vector.load %arg5[%c0_9, %c0_10] : memref<32x1xf32, #tpu.memory_space<vmem>>, vector<32x1xf32>
    %13 = vector.broadcast %12 : vector<32x1xf32> to vector<32x200xf32>
    %14 = arith.addf %11, %13 : vector<32x200xf32>
    %cst_11 = arith.constant 0.000000e+00 : f32
    %15 = vector.broadcast %cst_11 : f32 to vector<32x200xf32>
    %16 = arith.maximumf %14, %15 : vector<32x200xf32>
    %c0_12 = arith.constant 0 : index
    %c0_13 = arith.constant 0 : index
    %17 = vector.load %arg6[%c0_12, %c0_13] : memref<32x1xf32, #tpu.memory_space<vmem>>, vector<32x1xf32>
    %18 = vector.broadcast %17 : vector<32x1xf32> to vector<32x200xf32>
    %19 = arith.mulf %16, %18 : vector<32x200xf32>
    %cst_14 = arith.constant dense<0.000000e+00> : vector<200xf32>
    %20 = vector.multi_reduction <add>, %19, %cst_14 [0] : vector<32x200xf32> to vector<200xf32>
    %21 = vector.shape_cast %20 : vector<200xf32> to vector<1x200xf32>
    %c0_15 = arith.constant 0 : index
    %c0_16 = arith.constant 0 : index
    %22 = vector.load %arg7[%c0_15, %c0_16] : memref<1x1xf32, #tpu.memory_space<vmem>>, vector<1x1xf32>
    %23 = vector.broadcast %22 : vector<1x1xf32> to vector<1x200xf32>
    %24 = arith.addf %21, %23 : vector<1x200xf32>
    %c0_17 = arith.constant 0 : index
    %c0_18 = arith.constant 0 : index
    %25 = vector.load %arg8[%c0_17, %c0_18] : memref<1x200xf32, #tpu.memory_space<vmem>>, vector<1x200xf32>
    tpu.vector_store %arg8[%c0_17, %c0_18], %24 {strides = array<i32>} : memref<1x200xf32, #tpu.memory_space<vmem>>, vector<1x200xf32>,
    return
  }
  func.func @transform_0(%arg0: i32) -> (i32, i32) {
    %c0_i32 = arith.constant 0 : i32
    %c0_i32_0 = arith.constant 0 : i32
    return %arg0, %c0_i32 : i32, i32
  }
  func.func @transform_1(%arg0: i32) -> (i32, i32) {
    %c0_i32 = arith.constant 0 : i32
    %c0_i32_0 = arith.constant 0 : i32
    %c0_i32_1 = arith.constant 0 : i32
    return %c0_i32, %c0_i32_0 : i32, i32
  }
  func.func @transform_2(%arg0: i32) -> (i32, i32) {
    %c0_i32 = arith.constant 0 : i32
    %c0_i32_0 = arith.constant 0 : i32
    %c0_i32_1 = arith.constant 0 : i32
    return %c0_i32, %c0_i32_0 : i32, i32
  }
  func.func @transform_3(%arg0: i32) -> (i32, i32) {
    %c0_i32 = arith.constant 0 : i32
    %c0_i32_0 = arith.constant 0 : i32
    %c0_i32_1 = arith.constant 0 : i32
    return %c0_i32, %c0_i32_0 : i32, i32
  }
  func.func @transform_4(%arg0: i32) -> (i32, i32) {
    %c0_i32 = arith.constant 0 : i32
    %c0_i32_0 = arith.constant 0 : i32
    %c0_i32_1 = arith.constant 0 : i32
    return %c0_i32, %c0_i32_0 : i32, i32
  }
  func.func @transform_5(%arg0: i32) -> (i32, i32) {
    %c0_i32 = arith.constant 0 : i32
    %c0_i32_0 = arith.constant 0 : i32
    %c0_i32_1 = arith.constant 0 : i32
    return %c0_i32, %c0_i32_0 : i32, i32
  }
  func.func @transform_6(%arg0: i32) -> (i32, i32) {
    %c0_i32 = arith.constant 0 : i32
    %c0_i32_0 = arith.constant 0 : i32
    %c0_i32_1 = arith.constant 0 : i32
    return %c0_i32, %c0_i32_0 : i32, i32
  }
  func.func @transform_7(%arg0: i32) -> (i32, i32) {
    %c0_i32 = arith.constant 0 : i32
    %c0_i32_0 = arith.constant 0 : i32
    return %c0_i32, %arg0 : i32, i32
  }
}

</mosaic_0001>

<bundles_post_ra>
// kernel: ffnn_forward.1
= control target key start
LH: loop header
LB: loop body
LE: loop exit
PB: predicated region body
PF: predicated region fallthrough
CT: control target
= control target key end

     0   :  { %s791_s0 = inlined_call_operand.vmem [shape: f32[200,16], index: 0, kind: input, shape index: {}]   ;;  %s792_s1 = inlined_call_operand.vmem [shape: bf16[64,16], index: 1, kind: input, shape index: {}]   ;;  %s793_s2 = inlined_call_operand.vmem [shape: f32[64,1], index: 2, kind: input, shape index: {}]   ;;  %s794_s3 = inlined_call_operand.vmem [shape: bf16[32,64], index: 3, kind: input, shape index: {}]   ;;  %s795_s4 = inlined_call_operand.vmem [shape: f32[32,1], index: 4, kind: input, shape index: {}]   ;;  %s796_s5 = inlined_call_operand.vmem [shape: f32[32,1], index: 5, kind: input, shape index: {}]   ;;  %s797_s6 = inlined_call_operand.<no memory space> [shape: f32[1,1], index: 6, kind: input, shape index: {}]   ;;  %s798_s7 = inlined_call_operand.hbm [shape: f32[1,200], index: 7, kind: output, shape index: {}]  }
   0x1   :  { %v12_v0 = vstv %s797_s6 }
   0x2   :  { %13 = vst [vmem:[#allocation2] sm:$0x1] %v12_v0 }
   0x3   :  { %v30_v1 = vld [vmem:[%s791_s0] sm:$0xff]  ;;  %v31_v2 = vld [vmem:[%s791_s0 + $0x8] sm:$0xff]  ;;  %vm144_vm0 = vcmask 130048   ;;  %v550_v3 = vmov 0   ;;  %v32_v5 = vld [vmem:[%s791_s0 + $0x10] sm:$0xff] }
   0x4   :  { %196 = vmatprep.subr.bf16.mxu0 %v550_v3  ;;  %v55_v4 = vpack.c.bf16 %v31_v2, %v30_v1  ;;  %228 = vmatprep.mubr.bf16.mxu0 %v550_v3  ;;  %v33_v6 = vld [vmem:[%s791_s0 + $0x18] sm:$0xff]  ;;  %v34_v10 = vld [vmem:[%s791_s0 + $0x20] sm:$0xff]  ;;  %v35_v11 = vld [vmem:[%s791_s0 + $0x28] sm:$0xff] }
   0x5   :  { %518 = vset.pattern.permute.xlu0 %v550_v3  ;;  %519 = vset.pattern.permute.xlu1 %v550_v3  ;;  %v56_v8 = vpack.c.bf16 %v33_v6, %v32_v5  ;;  %v76_v12 = vld [vmem:[%s793_s2] sm:$0xff]  ;;  %v57_v13 = vpack.c.bf16 %v35_v11, %v34_v10  ;;  %v78_v14 = vld [vmem:[%s793_s2 + $0x10] sm:$0xff]  ;;  %v77_v15 = vld [vmem:[%s793_s2 + $0x8] sm:$0xff] }
   0x6   :  { %v158_v7 = vsel %vm144_vm0, %v55_v4, 0  ;;  %370 = vmatprep.mubr.bf16.mxu1 %v550_v3  ;;  %86 = vperm.xlu0 %518, %v76_v12   ;;  %v79_v16 = vld [vmem:[%s793_s2 + $0x18] sm:$0xff]  ;;  %v36_v18 = vld [vmem:[%s791_s0 + $0x30] sm:$0xff]  ;;  %v80_v20 = vld [vmem:[%s793_s2 + $0x20] sm:$0xff] }
   0x7   :  { %197 = vmatpush1.bf16.xpose.msra.mxu0 %v158_v7  ;;  %v161_v9 = vsel %vm144_vm0, %v56_v8, 0  ;;  %96 = vperm.xlu1 %519, %v78_v14   ;;  %v164_v17 = vsel %vm144_vm0, %v57_v13, 0  ;;  %v37_v19 = vld [vmem:[%s791_s0 + $0x38] sm:$0xff]  ;;  %v81_v21 = vld [vmem:[%s793_s2 + $0x28] sm:$0xff] }
   0x8   :  { %198 = vmatprep.subr.bf16.mxu0 %v550_v3 }
   0xa   :  { %91 = vperm.xlu0 %518, %v77_v15  }
   0xb   :  { %101 = vperm.xlu1 %519, %v79_v16  }
   0xf   :  { %199 = vmatpush1.bf16.xpose.msra.mxu0 %v161_v9 }
  0x10   :  { %200 = vmatprep.subr.bf16.mxu0 %v550_v3 }
  0x11   :  { %14 = vsyncpa [#allocation4], 0  ;;  %v58_v22 = vpack.c.bf16 %v37_v19, %v36_v18  ;;  %106 = vperm.xlu0 %518, %v80_v20   ;;  %v82_v23 = vld [vmem:[%s793_s2 + $0x30] sm:$0xff]  ;;  %111 = vperm.xlu1 %519, %v81_v21   ;;  %v83_v24 = vld [vmem:[%s793_s2 + $0x38] sm:$0xff]  ;;  %vm331_vm1 = vcmask 523264   ;;  %vm440_vm2 = vcmask 588800  }
  0x12   :  { %v38_v26 = vld [vmem:[%s791_s0 + $0x40] sm:$0xff]  ;;  %v39_v27 = vld [vmem:[%s791_s0 + $0x48] sm:$0xff]  ;;  %v299_v31 = vld [vmem:[%s795_s4 + $0x10] sm:$0xff] }
  0x13   :  { %v167_v25 = vsel %vm144_vm0, %v58_v22, 0  ;;  %v297_v28 = vld [vmem:[%s795_s4] sm:$0xff]  ;;  %v298_v29 = vld [vmem:[%s795_s4 + $0x8] sm:$0xff]  ;;  %v59_v30 = vpack.c.bf16 %v39_v27, %v38_v26  ;;  %v300_v32 = vld [vmem:[%s795_s4 + $0x18] sm:$0xff] }
  0x14   :  { %v40_v34 = vld [vmem:[%s791_s0 + $0x50] sm:$0xff]  ;;  %v41_v35 = vld [vmem:[%s791_s0 + $0x58] sm:$0xff]  ;;  %v399_v36 = vld [vmem:[%s796_s5] sm:$0xff] }
  0x15   :  { %116 = vperm.xlu0 %518, %v82_v23   ;;  %121 = vperm.xlu1 %519, %v83_v24   ;;  %v170_v33 = vsel %vm144_vm0, %v59_v30, 0  ;;  %v400_v37 = vld [vmem:[%s796_s5 + $0x8] sm:$0xff]  ;;  %v60_v38 = vpack.c.bf16 %v41_v35, %v40_v34  ;;  %v401_v39 = vld [vmem:[%s796_s5 + $0x10] sm:$0xff]  ;;  %v402_v40 = vld [vmem:[%s796_s5 + $0x18] sm:$0xff] }
  0x16   :  { %v42_v42 = vld [vmem:[%s791_s0 + $0x60] sm:$0xff]  ;;  %v43_v43 = vld [vmem:[%s791_s0 + $0x68] sm:$0xff]  ;;  %v44_v47 = vld [vmem:[%s791_s0 + $0x70] sm:$0xff] }
  0x17   :  { %201 = vmatpush1.bf16.xpose.msra.mxu0 %v164_v17  ;;  %v173_v41 = vsel %vm144_vm0, %v60_v38, 0  ;;  %v454_v44 = vld [vmem:[#allocation2] sm:$0x1]  ;;  %v61_v45 = vpack.c.bf16 %v43_v43, %v42_v42  ;;  %v45_v48 = vld [vmem:[%s791_s0 + $0x78] sm:$0xff]  ;;  %v47_v52 = vld [vmem:[%s791_s0 + $0x88] sm:$0xff] }
  0x18   :  { %202 = vmatprep.subr.bf16.mxu0 %v550_v3  ;;  %v62_v49 = vpack.c.bf16 %v45_v48, %v44_v47  ;;  %v46_v51 = vld [vmem:[%s791_s0 + $0x80] sm:$0xff]  ;;  %v48_v55 = vld [vmem:[%s791_s0 + $0x90] sm:$0xff]  ;;  %v49_v56 = vld [vmem:[%s791_s0 + $0x98] sm:$0xff] }
  0x19   :  { %303 = vperm.xlu0 %518, %v297_v28   ;;  %308 = vperm.xlu1 %519, %v298_v29   ;;  %v176_v46 = vsel %vm144_vm0, %v61_v45, 0  ;;  %v63_v53 = vpack.c.bf16 %v47_v52, %v46_v51  ;;  %v64_v57 = vpack.c.bf16 %v49_v56, %v48_v55  ;;  %v50_v59 = vld [vmem:[%s791_s0 + $0xa0] sm:$0xff]  ;;  %v51_v60 = vld [vmem:[%s791_s0 + $0xa8] sm:$0xff]  ;;  %v52_v63 = vld [vmem:[%s791_s0 + $0xb0] sm:$0xff] }
  0x1a   :  { %v179_v50 = vsel %vm144_vm0, %v62_v49, 0  ;;  %v65_v61 = vpack.c.bf16 %v51_v60, %v50_v59  ;;  %v53_v0 = vld [vmem:[%s791_s0 + $0xb8] sm:$0xff]  ;;  %v54_v4 = vld [vmem:[%s791_s0 + $0xc0] sm:$0xff]  ;;  %v521_v8 = vld [vmem:[%s792_s1 + $0x8] sm:$0xff]  }
  0x1b   :  { %v182_v54 = vsel %vm144_vm0, %v63_v53, 0  ;;  %v185_v58 = vsel %vm144_vm0, %v64_v57, 0  ;;  %v66_v1 = vpack.c.bf16 %v53_v0, %v52_v63  ;;  %v67_v5 = vpack.c.bf16 %v54_v4, %v54_v4  ;;  %v520_v7 = vld [vmem:[%s792_s1] sm:$0xff]   ;;  %v522_v9 = vld [vmem:[%s792_s1 + $0x10] sm:$0xff]   ;;  %v523_v10 = vld [vmem:[%s792_s1 + $0x18] sm:$0xff]  }
  0x1c   :  { %v188_v62 = vsel %vm144_vm0, %v65_v61, 0 }
  0x1d   :  { %313 = vperm.xlu0 %518, %v299_v31   ;;  %318 = vperm.xlu1 %519, %v300_v32   ;;  %v191_v2 = vsel %vm144_vm0, %v66_v1, 0  ;;  %v194_v6 = vsel %vm144_vm0, %v67_v5, 0 }
  0x1f   :  { %203 = vmatpush1.bf16.xpose.msra.mxu0 %v167_v25 }
  0x20   :  { %204 = vmatprep.subr.bf16.mxu0 %v550_v3 }
  0x21   :  { %405 = vperm.xlu0 %518, %v399_v36   ;;  %410 = vperm.xlu1 %519, %v400_v37  }
  0x25   :  { %415 = vperm.xlu0 %518, %v401_v39   ;;  %420 = vperm.xlu1 %519, %v402_v40  }
  0x27   :  { %205 = vmatpush1.bf16.xpose.msra.mxu0 %v170_v33 }
  0x28   :  { %206 = vmatprep.subr.bf16.mxu0 %v550_v3 }
  0x29   :  { %457 = vperm.xlu0 %518, %v454_v44  }
  0x2f   :  { %207 = vmatpush1.bf16.xpose.msra.mxu0 %v173_v41 }
  0x30   :  { %208 = vmatprep.subr.bf16.mxu0 %v550_v3 }
  0x37   :  { %209 = vmatpush1.bf16.xpose.msra.mxu0 %v176_v46 }
  0x38   :  { %210 = vmatprep.subr.bf16.mxu0 %v550_v3 }
  0x3f   :  { %211 = vmatpush1.bf16.xpose.msra.mxu0 %v179_v50 }
  0x40   :  { %212 = vmatprep.subr.bf16.mxu0 %v550_v3 }
  0x47   :  { %213 = vmatpush1.bf16.xpose.msra.mxu0 %v182_v54 }
  0x48   :  { %214 = vmatprep.subr.bf16.mxu0 %v550_v3 }
  0x4f   :  { %215 = vmatpush1.bf16.xpose.msra.mxu0 %v185_v58 }
  0x50   :  { %216 = vmatprep.subr.bf16.mxu0 %v550_v3 }
  0x57   :  { %217 = vmatpush1.bf16.xpose.msra.mxu0 %v188_v62 }
  0x58   :  { %218 = vmatprep.subr.bf16.mxu0 %v550_v3 }
  0x5f   :  { %219 = vmatpush1.bf16.xpose.msra.mxu0 %v191_v2 }
  0x60   :  { %220 = vmatprep.subr.bf16.mxu0 %v550_v3 }
  0x67   :  { %221 = vmatpush1.bf16.xpose.msra.mxu0 %v194_v6 }
  0x6e   :  { %507 = vmatmul.mubr.msk.bf16.vlgmr.msra.gmra.mrb[0].mxu0 %vm144_vm0, %v520_v7 }
  0x6f   :  { %238 = vmatprep.mubr.bf16.mxu0 %v550_v3 }
  0x76   :  { %508 = vmatmul.mubr.msk.bf16.gmra.mrb[4].mxu0 %vm144_vm0, %v521_v8 }
  0x77   :  { %248 = vmatprep.mubr.bf16.mxu0 %v550_v3 }
  0x7e   :  { %509 = vmatmul.mubr.msk.bf16.gmra.mrb[8].mxu0 %vm144_vm0, %v522_v9 }
  0x7f   :  { %258 = vmatprep.mubr.bf16.mxu0 %v550_v3 }
  0x85   :  { %v87_v11 = vpop.permute.xlu0 %86 }
  0x86   :  { %510 = vmatmul.mubr.msk.bf16.gmra.mrb[12].mxu0 %vm144_vm0, %v523_v10  ;;  %v97_v20 = vpop.permute.xlu1 %96 }
  0x89   :  { %v92_v15 = vpop.permute.xlu0 %91 }
  0x8a   :  { %v102_v31 = vpop.permute.xlu1 %101 }
  0x90   :  { %v107_v42 = vpop.permute.xlu0 %106  ;;  %v112_v47 = vpop.permute.xlu1 %111 }
  0x94   :  { %v117_v58 = vpop.permute.xlu0 %116  ;;  %v122_v63 = vpop.permute.xlu1 %121 }
 0x141   :  { %v230_v12 = vpop.f32.mrb[0].mxu0 }
 0x142   :  { %v231_v13 = vadd.f32 %v230_v12, %v87_v11  ;;  %v232_v14 = vpop.f32.mrb[1].mxu0  ;;  %v524_v12 = vld [vmem:[%s794_s3] sm:$0xff]  }
 0x143   :  { %v233_v16 = vadd.f32 %v232_v14, %v87_v11  ;;  %v234_v17 = vpop.f32.mrb[2].mxu0  ;;  %v304_v14 = vpop.permute.xlu0 %303 }
 0x144   :  { %v235_v18 = vadd.f32 %v234_v17, %v92_v15  ;;  %v236_v19 = vpop.f32.mrb[3].mxu0  ;;  %v269_v22 = vmax.f32 %v231_v13, 0.0  ;;  %v525_v13 = vld [vmem:[%s794_s3 + $0x8] sm:$0xff]   ;;  %s552_s3 = smov [#allocation3]  }
 0x145   :  { %v237_v21 = vadd.f32 %v236_v19, %v92_v15  ;;  %v270_v24 = vmax.f32 %v233_v16, 0.0  ;;  %v309_v15 = vpop.permute.xlu1 %308  ;;  %s495_s16 = sshll.u32 %s552_s3, 4  ;;  %s496_s16 = int_to_ptr.vmem [resolvable:$true] %s495_s16 }
 0x146   :  { %v271_v23 = vmax.f32 %v235_v18, 0.0  ;;  %s526_s17 = scalar_lea.vmem %s496_s16, 32  ;;  %p531_p1 = scmp.lt.s32.totalorder %s496_s16, %s496_s16 }
 0x147   :  { %v272_v25 = vmax.f32 %v237_v21, 0.0  ;;  %v314_v16 = vpop.permute.xlu0 %313  ;;  %p527_p0 = scmp.ne.s32.totalorder %s496_s16, %s526_s17  ;;  %p532_p2 = scmp.lt.s32.totalorder %s526_s17, %s526_s17 }
 0x148   :  { %v289_v26 = vpack.c.bf16 %v271_v23, %v269_v22 }
 0x149   :  { %v240_v27 = vpop.f32.mrb[4].mxu0  ;;  %v290_v28 = vpack.c.bf16 %v272_v25, %v270_v24  ;;  %v319_v17 = vpop.permute.xlu1 %318  ;;  %p533_p3 = por %p532_p2, %p531_p1 }
 0x14a   :  { %v241_v29 = vadd.f32 %v240_v27, %v97_v20  ;;  %v242_v30 = vpop.f32.mrb[5].mxu0 }
 0x14b   :  { %v243_v32 = vadd.f32 %v242_v30, %v97_v20  ;;  %v244_v33 = vpop.f32.mrb[6].mxu0  ;;  %338 = vmatprep.subr.bf16.mxu1 %v290_v28  ;;  %p534_p4 = pnand %p533_p3, %p527_p0 }
 0x14c   :  { %v245_v34 = vadd.f32 %v244_v33, %v102_v31  ;;  %v246_v35 = vpop.f32.mrb[7].mxu0  ;;  %339 = vmatpush1.bf16.msra.mxu1 %v289_v26  ;;  %v273_v37 = vmax.f32 %v241_v29, 0.0 }
 0x14d   :  { %v247_v36 = vadd.f32 %v246_v35, %v102_v31  ;;  %v274_v39 = vmax.f32 %v243_v32, 0.0  ;;  %v411_v29 = vpop.permute.xlu1 %410 }
 0x14e   :  { %v275_v38 = vmax.f32 %v245_v34, 0.0 }
 0x14f   :  { %v276_v40 = vmax.f32 %v247_v36, 0.0 }
 0x150   :  { %v291_v41 = vpack.c.bf16 %v275_v38, %v273_v37 }
 0x151   :  { %v292_v43 = vpack.c.bf16 %v276_v40, %v274_v39  ;;  %v250_v44 = vpop.f32.mrb[8].mxu0 }
 0x152   :  { %v251_v45 = vadd.f32 %v250_v44, %v107_v42  ;;  %v252_v46 = vpop.f32.mrb[9].mxu0 }
 0x153   :  { %v253_v48 = vadd.f32 %v252_v46, %v107_v42  ;;  %v254_v49 = vpop.f32.mrb[10].mxu0  ;;  %340 = vmatprep.subr.bf16.mxu1 %v292_v43 }
 0x154   :  { %v255_v50 = vadd.f32 %v254_v49, %v112_v47  ;;  %v256_v51 = vpop.f32.mrb[11].mxu0  ;;  %341 = vmatpush1.bf16.msra.mxu1 %v291_v41  ;;  %v277_v53 = vmax.f32 %v251_v45, 0.0 }
 0x155   :  { %v257_v52 = vadd.f32 %v256_v51, %v112_v47  ;;  %v278_v55 = vmax.f32 %v253_v48, 0.0 }
 0x156   :  { %v279_v54 = vmax.f32 %v255_v50, 0.0 }
 0x157   :  { %v280_v56 = vmax.f32 %v257_v52, 0.0  ;;  %v421_v52 = vpop.permute.xlu1 %420 }
 0x158   :  { %v293_v57 = vpack.c.bf16 %v279_v54, %v277_v53 }
 0x159   :  { %v294_v59 = vpack.c.bf16 %v280_v56, %v278_v55  ;;  %v260_v60 = vpop.f32.mrb[12].mxu0 }
 0x15a   :  { %v261_v61 = vadd.f32 %v260_v60, %v117_v58  ;;  %v262_v62 = vpop.f32.mrb[13].mxu0 }
 0x15b   :  { %v263_v0 = vadd.f32 %v262_v62, %v117_v58  ;;  %v264_v1 = vpop.f32.mrb[14].mxu0  ;;  %342 = vmatprep.subr.bf16.mxu1 %v294_v59  ;;  %v460_v62 = vlaneseq }
 0x15c   :  { %v265_v2 = vadd.f32 %v264_v1, %v122_v63  ;;  %v266_v4 = vpop.f32.mrb[15].mxu0  ;;  %343 = vmatpush1.bf16.msra.mxu1 %v293_v57  ;;  %v281_v6 = vmax.f32 %v261_v61, 0.0 }
 0x15d   :  { %v267_v5 = vadd.f32 %v266_v4, %v122_v63  ;;  %v282_v8 = vmax.f32 %v263_v0, 0.0  ;;  %v461_v4 = vshrl.u32 %v460_v62, 7  ;;  %vm486_vm3 = vcmp.lt.s32.totalorder %v460_v62, 200 }
 0x15e   :  { %v283_v7 = vmax.f32 %v265_v2, 0.0 }
 0x15f   :  { %v284_v9 = vmax.f32 %v267_v5, 0.0 }
 0x160   :  { %v295_v10 = vpack.c.bf16 %v283_v7, %v281_v6 }
 0x161   :  { %v296_v11 = vpack.c.bf16 %v284_v9, %v282_v8  ;;  %v551_v9 = vmov 1966171168  }
 0x163   :  { %344 = vmatprep.subr.bf16.mxu1 %v296_v11  ;;  %v462_v11 = vsub.s32 0, %v461_v4 }
 0x164   :  { %345 = vmatpush1.bf16.msra.mxu1 %v295_v10  ;;  %v470_v10 = vunpack.c.l.s4 %v551_v9 }
 0x167   :  { %513 = vmatmul.mubr.msk.bf16.vlgmr.msra.gmra.mrb[0].mxu1 %vm331_vm1, %v524_v12 }
 0x168   :  { %380 = vmatprep.mubr.bf16.mxu1 %v550_v3  ;;  %v406_v3 = vpop.permute.xlu0 %405 }
 0x16c   :  { %v416_v47 = vpop.permute.xlu0 %415 }
 0x16f   :  { %514 = vmatmul.mubr.msk.bf16.gmra.mrb[4].mxu1 %vm331_vm1, %v525_v13 }
 0x23a   :  { %v372_v18 = vpop.f32.mrb[0].mxu1 }
 0x23b   :  { %v373_v19 = vadd.f32 %v372_v18, %v304_v14  ;;  %v374_v20 = vpop.f32.mrb[1].mxu1 }
 0x23c   :  { %v375_v21 = vadd.f32 %v374_v20, %v304_v14  ;;  %v376_v22 = vpop.f32.mrb[2].mxu1  ;;  %v458_v14 = vpop.permute.xlu0 %457 }
 0x23d   :  { %v391_v23 = vmax.f32 %v373_v19, 0.0  ;;  %v377_v24 = vadd.f32 %v376_v22, %v309_v15  ;;  %v378_v25 = vpop.f32.mrb[3].mxu1  ;;  %v463_v18 = vrot.slane %v458_v14, %v462_v11 }
 0x23e   :  { %v392_v26 = vmax.f32 %v375_v21, 0.0  ;;  %v379_v27 = vadd.f32 %v378_v25, %v309_v15 }
 0x23f   :  { %v393_v28 = vmax.f32 %v377_v24, 0.0  ;;  %v423_v32 = vmul.f32 %v406_v3, %v391_v23 }
 0x240   :  { %v424_v30 = vmul.f32 %v406_v3, %v392_v26  ;;  %v394_v31 = vmax.f32 %v379_v27, 0.0 }
 0x241   :  { %v425_v33 = vmul.f32 %v411_v29, %v393_v28 }
 0x242   :  { %v426_v34 = vmul.f32 %v411_v29, %v394_v31  ;;  %v382_v35 = vpop.f32.mrb[4].mxu1  ;;  %v441_v39 = vsel %vm440_vm2, %v424_v30, 0.0 }
 0x243   :  { %v431_v36 = vadd.f32 %v425_v33, %v423_v32  ;;  %v383_v37 = vadd.f32 %v382_v35, %v314_v16  ;;  %v384_v38 = vpop.f32.mrb[5].mxu1 }
 0x244   :  { %v442_v40 = vsel %vm440_vm2, %v426_v34, 0.0  ;;  %v385_v41 = vadd.f32 %v384_v38, %v314_v16  ;;  %v386_v42 = vpop.f32.mrb[6].mxu1 }
 0x245   :  { %v443_v43 = vadd.f32 %v442_v40, %v441_v39  ;;  %v395_v44 = vmax.f32 %v383_v37, 0.0  ;;  %v387_v45 = vadd.f32 %v386_v42, %v319_v17  ;;  %v388_v46 = vpop.f32.mrb[7].mxu1 }
 0x246   :  { %v396_v48 = vmax.f32 %v385_v41, 0.0  ;;  %v389_v49 = vadd.f32 %v388_v46, %v319_v17  ;;  %v471_v17 = vunpack.c.0.s8 %v470_v10 }
 0x247   :  { %v427_v50 = vmul.f32 %v416_v47, %v395_v44  ;;  %v397_v51 = vmax.f32 %v387_v45, 0.0 }
 0x248   :  { %v428_v53 = vmul.f32 %v416_v47, %v396_v48  ;;  %v398_v54 = vmax.f32 %v389_v49, 0.0  ;;  %v474_v22 = vsub.s32 %v471_v17, %v461_v4 }
 0x249   :  { %v432_v55 = vadd.f32 %v431_v36, %v427_v50  ;;  %v429_v56 = vmul.f32 %v421_v52, %v397_v51 }
 0x24a   :  { %v444_v57 = vsel %vm440_vm2, %v428_v53, 0.0  ;;  %v430_v58 = vmul.f32 %v421_v52, %v398_v54 }
 0x24b   :  { %v445_v59 = vadd.f32 %v444_v57, %v443_v43  ;;  %v433_v60 = vadd.f32 %v432_v55, %v429_v56 }
 0x24c   :  { %v446_v61 = vsel %vm440_vm2, %v430_v58, 0.0 }
 0x24d   :  { %v434_v63 = vrot.slane %v433_v60, 4  ;;  %v447_v0 = vadd.f32 %v446_v61, %v445_v59 }
 0x24f   :  { %v435_v1 = vadd.f32 %v434_v63, %v433_v60  ;;  %v448_v2 = vrot.slane %v447_v0, 4 }
 0x251   :  { %v436_v5 = vrot.slane %v435_v1, 2  ;;  %v449_v6 = vadd.f32 %v448_v2, %v447_v0 }
 0x253   :  { %v437_v7 = vadd.f32 %v436_v5, %v435_v1  ;;  %v450_v8 = vrot.slane %v449_v6, 2 }
 0x255   :  { %v438_v12 = vrot.slane %v437_v7, 1  ;;  %v451_v13 = vadd.f32 %v450_v8, %v449_v6 }
 0x257   :  { %v439_v15 = vadd.f32 %v438_v12, %v437_v7  ;;  %v452_v16 = vrot.slane %v451_v13, 1 }
 0x259   :  { %v453_v19 = vadd.f32 %v452_v16, %v451_v13  ;;  %v464_v20 = vadd.f32 %v463_v18, %v439_v15 }
 0x25b   :  { %v465_v21 = vadd.f32 %v463_v18, %v453_v19 }
 0x25d   :  { %v468_v23 = vcombine.low %v464_v20, %v465_v21 }
 0x25f   :  { %v475_v24 = vrot.slane %v468_v23, %v474_v22 }
 0x261   :  { %v482_v25 = vrot.slane %v475_v24, %v474_v22 }
 0x263   :  { %488 = vst.msk [vmem:[#allocation3] sm:$0x3] %vm486_vm3, %v482_v25 }
 0x264   :  { %537 = shalt.err (!%p534_p4)
}
 0x265   :  { %s538_s19 = scalar_lea.hbm %s798_s7, 32 }
 0x266   :  { %p539_p5 = scmp.ne.s32.totalorder %s798_s7, %s538_s19  ;;  %p542_p6 = scmp.lt.u32.totalorder %s538_s19, %s798_s7 }
 0x268   :  { %p544_p7 = pnand %p542_p6, %p539_p5 }
 0x26a   :  { %547 = shalt.err (!%p544_p7)
}
 0x26b   :  { %498 = dma.vmem_to_hbm [thread:$0]  %s496_s16, 32, %s798_s7, [#allocation4]  }
 0x26c   :  { %548 = dma.done.wait [#allocation4], 32  }
 0x26d   :  { %549 = vsyncadd [#allocation4], 4294967264 }
 0x26e   :  { %502 = vsyncpa [#allocation4], 1 }

</bundles_post_ra>
